<compile_context>
chip_gen: v5e
topology: v5e:2x2
jax: 0.10.0
libtpu: 0.0.40
codegen_flags: <defaults>
</compile_context>

<pallas_src>
import functools

import jax
import jax.numpy as jnp
from jax.experimental import pallas as pl
from jax.experimental.pallas import tpu as pltpu


def gat_kernel(x_ref, w_ref, o_ref, *, alpha, mu):
    # x_ref : (BB, N, F_in)        BB batch elements for this grid step
    # w_ref : (F_in, F_out + 2)    fused [W | W@a1 | W@a2] (grid-invariant)
    # o_ref : (1, BB, F_out)       h_prime slab for this grid step
    BB, N, F_in = x_ref.shape
    F_out = o_ref.shape[2]
    F_aug = w_ref.shape[1]

    # Single MXU matmul for all BB*N rows. x is cast to the weight dtype here
    # (in-kernel VPU convert) so a bf16 MXU path never costs an extra HBM pass.
    # NOTE: keep N a multiple of 8 sublanes so this reshape is layout-free.
    x = x_ref[...].reshape(BB * N, F_in).astype(w_ref.dtype)
    h_aug = jnp.dot(x, w_ref[...], preferred_element_type=jnp.float32)
    h_aug = h_aug.reshape(BB, N, F_aug)                      # (BB, N, F_out+2) f32

    h3 = h_aug[:, :, :F_out]                                 # projected features h
    s1 = h_aug[:, :, F_out]                                  # (BB, N)  == h @ a1
    s2 = h_aug[:, 0:1, F_out + 1]                            # (BB, 1)  == h[:,0,:] @ a2
    e = s1 + s2                                              # (BB, N)  nodes on lanes
    e = jnp.where(e >= 0.0, e, alpha * e)                    # LeakyReLU(alpha)

    # softmax over the node dimension (torch dim=1) -- lane-axis reductions.
    e_max = jnp.max(e, axis=-1, keepdims=True)
    p = jnp.exp(e - e_max)
    denom = jnp.sum(p, axis=-1, keepdims=True)
    att = p * pl.reciprocal(denom, approx=False)             # exact: matches reference

    # attention = relu(attention - mu)   ( (x + |x|)/2 == max(x, 0) )
    att = jnp.maximum(att - mu, 0.0)                         # (BB, N)

    # TODO(synk): F.dropout on attention omitted (inference / training=False path).

    # h_prime[b, :] = sum_n att[b, n] * h[b, n, :]
    # Small N -> VPU multiply + sublane reduce; switch to a batched MXU
    # contraction only if N grows large and profiling shows VPU/XLU bound.
    h_prime = jnp.sum(att[:, :, None] * h3, axis=1)          # (BB, F_out)
    o_ref[0] = h_prime.astype(o_ref.dtype)


def _tpu_generation():
    try:
        kind = jax.devices()[0].device_kind.lower()
    except Exception:
        return "unknown"
    if "v7" in kind:
        return "v7x"
    if "v6" in kind:
        return "v6e"
    if "v5e" in kind or "v5 lite" in kind or "v5litepod" in kind:
        return "v5e"
    return "unknown"


# (min_grid, vmem_budget_bytes, vmem_limit_bytes, mxu_m_target)
#  * v5e/v6e: 1 TensorCore -> min_grid=1; large tile budgets (128 MiB physical).
#  * v7x: 2 TensorCores -> min_grid=2, and only 64 MiB VMEM per TC.
_GEN_CONFIG = {
    "v5e": (1, 48 << 20, 96 << 20, 128),
    "v6e": (1, 80 << 20, 100 << 20, 256),
    "v7x": (2, 44 << 20, 48 << 20, 256),
    "unknown": (1, 16 << 20, None, 128),
}


def _choose_block_b(B, N, F_in, F_aug, F_out, *, x_itemsize, w_itemsize,
                    vmem_budget_bytes, min_grid, mxu_m_target):
    """Pick the largest divisor of B that (a) keeps >= min_grid grid steps when
    possible, (b) fits the per-step VMEM budget with double-buffering counted
    at 2x (x, out, and the grid-invariant W are all double-buffered by the
    default BlockSpec pipeline), and (c) prefers MXU-friendly M = block_b*N
    (>= mxu_m_target rows, multiple of 8 sublanes)."""

    def step_bytes(bb):
        x_b = bb * N * F_in * x_itemsize
        o_b = bb * F_out * 4
        w_b = F_in * F_aug * w_itemsize
        tmp = bb * N * F_aug * 4 + bb * N * 4 + bb * F_out * 4   # f32 intermediates
        return 2 * (x_b + o_b + w_b) + tmp

    best, best_key = 1, (-1, -1, -1)
    for bb in range(1, B + 1):
        if B % bb:
            continue
        if B >= min_grid and (B // bb) < min_grid:
            continue
        if step_bytes(bb) > vmem_budget_bytes:
            continue
        key = (int(bb * N >= mxu_m_target), int((bb * N) % 8 == 0), bb)
        if key > best_key:
            best_key, best = key, bb
    return best


def gat_forward(x, W, a, *, alpha, mu, concat=False, block_b=None, mxu_dtype=None):
    """GAT layer forward. `mxu_dtype=jnp.bfloat16` casts the (small) fused W in
    the wrapper and x inside the kernel; accumulation stays f32."""
    B, N, F_in = x.shape
    F_out = W.shape[1]
    out_dtype = x.dtype

    # Fuse the attention vector into the projection: W_aug = [W | W@a1 | W@a2].
    # Then h_aug[..., :F_out] = h, h_aug[..., F_out] = h@a1,
    # h_aug[..., F_out+1] = h@a2 -- the score path needs no extra VPU/XLU work.
    a_flat = a.reshape(2 * F_out).astype(jnp.float32)
    W32 = W.astype(jnp.float32)
    a1_col = W32 @ a_flat[:F_out]
    a2_col = W32 @ a_flat[F_out:]
    W_aug = jnp.concatenate([W32, a1_col[:, None], a2_col[:, None]], axis=1)
    F_aug = F_out + 2

    if mxu_dtype is not None:
        W_aug = W_aug.astype(mxu_dtype)   # small; x is cast in-kernel instead

    gen = _tpu_generation()
    min_grid, vmem_budget, vmem_limit, mxu_m_target = _GEN_CONFIG[gen]

    if block_b is None:
        block_b = _choose_block_b(
            B, N, F_in, F_aug, F_out,
            x_itemsize=jnp.dtype(x.dtype).itemsize,
            w_itemsize=jnp.dtype(W_aug.dtype).itemsize,
            vmem_budget_bytes=vmem_budget,
            min_grid=min_grid,
            mxu_m_target=mxu_m_target)
    assert B % block_b == 0, "block_b must divide B"
    G = B // block_b

    cp_kwargs = dict(dimension_semantics=("parallel",))
    if vmem_limit is not None:
        cp_kwargs["vmem_limit_bytes"] = vmem_limit
    compiler_params = pltpu.CompilerParams(**cp_kwargs)

    # Output laid out as (G, BB, F_out) so every block's last two dims equal the
    # full array dims (dense, unmasked stores); reshaped to (B, F_out) after.
    # TODO(synk): for production sizes, pad F_in/F_out to multiples of 128 (or
    # pack heads along the lane axis) so matmul operands and stores are lane-dense.
    out = pl.pallas_call(
        functools.partial(gat_kernel, alpha=alpha, mu=mu),
        out_shape=jax.ShapeDtypeStruct((G, block_b, F_out), out_dtype),
        grid=(G,),
        in_specs=[
            pl.BlockSpec((block_b, N, F_in), lambda g: (g, 0, 0)),
            pl.BlockSpec((F_in, F_aug), lambda g: (0, 0)),
        ],
        out_specs=pl.BlockSpec((1, block_b, F_out), lambda g: (g, 0, 0)),
        compiler_params=compiler_params,
    )(x, W_aug)

    h_prime = out.reshape(B, F_out)
    if concat:
        h_prime = jax.nn.elu(h_prime)
    return h_prime


def gat_reference(x, W, a, *, alpha, mu, concat=False):
    """Pure-JAX replica of the PyTorch forward (training=False dropout)."""
    h = jnp.einsum("bnf,fo->bno", x, W)
    B, N, F_out = h.shape
    rep = jnp.broadcast_to(h[:, 0:1, :], (B, N, F_out))
    a_input = jnp.concatenate([h, rep], axis=2)                 # (B, N, 2*F_out)
    e = jnp.einsum("bnc,co->bno", a_input, a)                   # (B, N, 1)
    e = jnp.where(e >= 0.0, e, alpha * e)
    att = jax.nn.softmax(e, axis=1)
    att = att - mu
    att = (att + jnp.abs(att)) / 2.0
    att = att.reshape(B, 1, N)
    h_prime = jnp.einsum("bon,bnf->bof", att, h)[:, 0, :]
    if concat:
        h_prime = jax.nn.elu(h_prime)
    return h_prime


def xavier_uniform(key, shape, gain):
    fan_in, fan_out = shape[0], shape[1]
    bound = gain * jnp.sqrt(6.0 / (fan_in + fan_out))
    return jax.random.uniform(key, shape, jnp.float32, -bound, bound)


if __name__ == "__main__":
    # Small shapes consistent with the module: [B, N, in_features]
    B, N, F_IN, F_OUT = 4, 8, 32, 32
    ALPHA = 0.2        # LeakyReLU negative slope
    MU = 0.001
    DROPOUT = 0.1      # unused (inference path)

    key = jax.random.PRNGKey(0)
    kx, kw, ka = jax.random.split(key, 3)

    x = jax.random.normal(kx, (B, N, F_IN), dtype=jnp.float32)
    W = xavier_uniform(kw, (F_IN, F_OUT), gain=1.414)
    a = xavier_uniform(ka, (2 * F_OUT, 1), gain=1.414)

    out = gat_forward(x, W, a, alpha=ALPHA, mu=MU, concat=False)
    out = jax.block_until_ready(out)

    ref = gat_reference(x, W, a, alpha=ALPHA, mu=MU, concat=False)
    assert out.shape == (B, F_OUT)
    # Exact-reciprocal softmax; only residual difference is f32 reassociation
    # from fusing a1/a2 into the projection ( (xW)a vs x(Wa) ).
    err = float(jnp.max(jnp.abs(out - ref)))
    assert err < 1e-3, f"mismatch vs reference, max abs err = {err}"

    print("KERNEL_OK")
</pallas_src>

<mosaic_0001>
module attributes {stable_mosaic.version = 11 : i64} {
  func.func @gat_kernel(%arg0: i32, %arg1: memref<4x8x32xf32, #tpu.memory_space<vmem>>, %arg2: memref<32x34xf32, #tpu.memory_space<vmem>>, %arg3: memref<1x4x32xf32, #tpu.memory_space<vmem>>) attributes {dimension_semantics = [#tpu.dimension_semantics<parallel>], iteration_bounds = array<i64: 1>, scalar_prefetch = 0 : i64, scratch_operands = 0 : i64, tpu.core_type = #tpu.core_type<tc>, window_params = [{transform_indices = @transform_0, window_bounds = array<i64: 4, 8, 32>}, {pipeline_mode = #tpu.pipeline_mode<synchronous>, transform_indices = @transform_1, window_bounds = array<i64: 32, 34>}, {transform_indices = @transform_2, window_bounds = array<i64: 1, 4, 32>}]} {
    %c0 = arith.constant 0 : index
    %c0_0 = arith.constant 0 : index
    %c0_1 = arith.constant 0 : index
    %0 = vector.load %arg1[%c0, %c0_0, %c0_1] : memref<4x8x32xf32, #tpu.memory_space<vmem>>, vector<4x8x32xf32>
    %1 = vector.shape_cast %0 : vector<4x8x32xf32> to vector<32x32xf32>
    %c0_2 = arith.constant 0 : index
    %c0_3 = arith.constant 0 : index
    %2 = vector.load %arg2[%c0_2, %c0_3] : memref<32x34xf32, #tpu.memory_space<vmem>>, vector<32x34xf32>
    %cst = arith.constant dense<0.000000e+00> : vector<32x34xf32>
    %3 = tpu.matmul %1, %2, %cst {dimension_numbers = #tpu.dot_dimension_numbers<[1], [0], [0], [1], [0, 0, 1, 1], [], []>} : vector<32x32xf32>, vector<32x34xf32>, vector<32x34xf32> -> vector<32x34xf32>
    %4 = vector.shape_cast %3 : vector<32x34xf32> to vector<4x8x34xf32>
    %5 = vector.extract_strided_slice %4 {offsets = [0, 0, 0], sizes = [4, 8, 32], strides = [1, 1, 1]} : vector<4x8x34xf32> to vector<4x8x32xf32>
    %6 = vector.extract_strided_slice %4 {offsets = [0, 0, 32], sizes = [4, 8, 1], strides = [1, 1, 1]} : vector<4x8x34xf32> to vector<4x8x1xf32>
    %7 = vector.shape_cast %6 : vector<4x8x1xf32> to vector<4x8xf32>
    %8 = vector.extract_strided_slice %4 {offsets = [0, 0, 33], sizes = [4, 1, 1], strides = [1, 1, 1]} : vector<4x8x34xf32> to vector<4x1x1xf32>
    %9 = vector.shape_cast %8 : vector<4x1x1xf32> to vector<4x1xf32>
    %10 = vector.broadcast %9 : vector<4x1xf32> to vector<4x8xf32>
    %11 = arith.addf %7, %10 : vector<4x8xf32>
    %cst_4 = arith.constant 0.000000e+00 : f32
    %12 = vector.broadcast %cst_4 : f32 to vector<4x8xf32>
    %13 = arith.cmpf oge, %11, %12 : vector<4x8xf32>
    %cst_5 = arith.constant 2.000000e-01 : f32
    %14 = vector.broadcast %cst_5 : f32 to vector<4x8xf32>
    %15 = arith.mulf %14, %11 : vector<4x8xf32>
    %16 = arith.select %13, %11, %15 : vector<4x8xi1>, vector<4x8xf32>
    %cst_6 = arith.constant dense<0xFF800000> : vector<4xf32>
    %17 = vector.multi_reduction <maximumf>, %16, %cst_6 [1] : vector<4x8xf32> to vector<4xf32>
    %18 = vector.shape_cast %17 : vector<4xf32> to vector<4x1xf32>
    %19 = vector.broadcast %18 : vector<4x1xf32> to vector<4x8xf32>
    %20 = arith.subf %16, %19 : vector<4x8xf32>
    %21 = math.exp %20 : vector<4x8xf32>
    %cst_7 = arith.constant dense<0.000000e+00> : vector<4xf32>
    %22 = vector.multi_reduction <add>, %21, %cst_7 [1] : vector<4x8xf32> to vector<4xf32>
    %23 = vector.shape_cast %22 : vector<4xf32> to vector<4x1xf32>
    %24 = tpu.reciprocal %23 : vector<4x1xf32> -> vector<4x1xf32>
    %25 = vector.broadcast %24 : vector<4x1xf32> to vector<4x8xf32>
    %26 = arith.mulf %21, %25 : vector<4x8xf32>
    %cst_8 = arith.constant 1.000000e-03 : f32
    %27 = vector.broadcast %cst_8 : f32 to vector<4x8xf32>
    %28 = arith.subf %26, %27 : vector<4x8xf32>
    %cst_9 = arith.constant 0.000000e+00 : f32
    %29 = vector.broadcast %cst_9 : f32 to vector<4x8xf32>
    %30 = arith.maximumf %28, %29 : vector<4x8xf32>
    %31 = vector.shape_cast %30 : vector<4x8xf32> to vector<4x8x1xf32>
    %32 = vector.broadcast %31 : vector<4x8x1xf32> to vector<4x8x32xf32>
    %33 = arith.mulf %32, %5 : vector<4x8x32xf32>
    %cst_10 = arith.constant dense<0.000000e+00> : vector<4x32xf32>
    %34 = vector.multi_reduction <add>, %33, %cst_10 [1] : vector<4x8x32xf32> to vector<4x32xf32>
    %c0_11 = arith.constant 0 : index
    %c0_12 = arith.constant 0 : index
    %c0_13 = arith.constant 0 : index
    %35 = vector.load %arg3[%c0_11, %c0_12, %c0_13] : memref<1x4x32xf32, #tpu.memory_space<vmem>>, vector<1x4x32xf32>
    %36 = vector.shape_cast %35 : vector<1x4x32xf32> to vector<4x32xf32>
    %37 = vector.shape_cast %34 : vector<4x32xf32> to vector<1x4x32xf32>
    tpu.vector_store %arg3[%c0_11, %c0_12, %c0_13], %37 {strides = array<i32>} : memref<1x4x32xf32, #tpu.memory_space<vmem>>, vector<1x4x32xf32>,
    return
  }
  func.func @transform_0(%arg0: i32) -> (i32, i32, i32) {
    %c0_i32 = arith.constant 0 : i32
    %c0_i32_0 = arith.constant 0 : i32
    %c0_i32_1 = arith.constant 0 : i32
    return %arg0, %c0_i32, %c0_i32_0 : i32, i32, i32
  }
  func.func @transform_1(%arg0: i32) -> (i32, i32) {
    %c0_i32 = arith.constant 0 : i32
    %c0_i32_0 = arith.constant 0 : i32
    %c0_i32_1 = arith.constant 0 : i32
    return %c0_i32, %c0_i32_0 : i32, i32
  }
  func.func @transform_2(%arg0: i32) -> (i32, i32, i32) {
    %c0_i32 = arith.constant 0 : i32
    %c0_i32_0 = arith.constant 0 : i32
    %c0_i32_1 = arith.constant 0 : i32
    return %arg0, %c0_i32, %c0_i32_0 : i32, i32, i32
  }
}

</mosaic_0001>

<bundles_post_ra>
// kernel: tpu_custom_call.1
= control target key start
LH: loop header
LB: loop body
LE: loop exit
PB: predicated region body
PF: predicated region fallthrough
CT: control target
= control target key end

     0   :  { %7 = vsyncpa [#allocation3], 0  ;;  %s520_s0 = inlined_call_operand.hbm [shape: f32[4,8,32], index: 0, kind: input, shape index: {}]   ;;  %s521_s1 = inlined_call_operand.hbm [shape: f32[32,34], index: 1, kind: input, shape index: {}]   ;;  %s522_s2 = inlined_call_operand.hbm [shape: f32[1,4,32], index: 2, kind: output, shape index: {}]  }
   0x1   :  { %8 = vsyncpa [#allocation6], 0 }
   0x2   :  { %9 = vsyncpa [#allocation4], 0  ;;  %s14_s11 = sshll.u32 %s520_s0, 4  ;;  %s450_s12 = smov [#allocation2]   ;;  %s15_s11 = int_to_ptr.hbm [resolvable:$true] %s14_s11 }
   0x3   :  { %s16_s13 = sshll.u32 %s450_s12, 4  ;;  %s27_s16 = sshll.u32 %s521_s1, 4  ;;  %s17_s13 = int_to_ptr.vmem [resolvable:$true] %s16_s13  ;;  %s28_s16 = int_to_ptr.hbm [resolvable:$true] %s27_s16 }
   0x4   :  { %s451_s17 = smov 128   ;;  %s452_s18 = smov 8  }
   0x5   :  { %22 = dma.hbm_to_vmem [thread:$0]  %s15_s11, 512, %s17_s13, [#allocation3], %s451_s17, %s451_s17, %s452_s18  }
   0x6   :  { %s453_s19 = smov [#allocation5]  }
   0x7   :  { %s29_s20 = sshll.u32 %s453_s19, 4  ;;  %s30_s20 = int_to_ptr.vmem [resolvable:$true] %s29_s20 }
   0x8   :  { %35 = dma.hbm_to_vmem [thread:$0]  %s28_s16, 512, %s30_s20, [#allocation6], %s451_s17, %s451_s17, %s452_s18  }
   0x9   :  { %444 = dma.done.wait [#allocation3], 512  }
   0xa   :  { %445 = vsyncadd [#allocation3], 4294966784 }
   0xb   :  { %446 = dma.done.wait [#allocation6], 512  }
   0xc   :  { %447 = vsyncadd [#allocation6], 4294966784  ;;  %v454_v0 = vmov 33   ;;  %v51_v1 = vld [vmem:[#allocation5 + $0x18] sm:$0xff]  ;;  %v50_v2 = vld [vmem:[#allocation5 + $0x10] sm:$0xff]  ;;  %vm52_vm0 = vcmask 261120   ;;  %v150_v35 = vlaneseq }
   0xd   :  { %357 = vset.pattern.permute.xlu0 %v454_v0  ;;  %358 = vset.pattern.permute.xlu1 %v454_v0  ;;  %v49_v3 = vld [vmem:[#allocation5 + $0x8] sm:$0xff]  ;;  %v48_v4 = vld [vmem:[#allocation5] sm:$0xff]  ;;  %v46_v6 = vld [vmem:[#allocation2 + $0x10] sm:$0xff]  ;;  %v455_v13 = vmov 32   ;;  %vm156_vm5 = vcmask 1041409   ;;  %vm158_vm6 = vcmask 1042434  }
   0xe   :  { %77 = vmatpush.msra.mxu0 %v51_v1  ;;  %339 = vmatpush.msra.mxu2 %v51_v1  ;;  %v44_v5 = vld [vmem:[#allocation2] sm:$0xff]  ;;  %v45_v7 = vld [vmem:[#allocation2 + $0x8] sm:$0xff]  ;;  %v47_v8 = vld [vmem:[#allocation2 + $0x18] sm:$0xff]  ;;  %v151_v37 = vand.u32 127, %v150_v35  ;;  %vm160_vm7 = vcmask 1043459   ;;  %vm163_vm8 = vcmask 60416  }
   0xf   :  { %338 = vmatpush.msra.mxu1 %v51_v1  ;;  %340 = vmatpush.msra.mxu3 %v51_v1  ;;  %s456_s0 = smov [#allocation7]   ;;  %s319_s23 = sshll.u32 %s522_s2, 4  ;;  %vm310_vm13 = vcmask 257024   ;;  %s320_s23 = int_to_ptr.hbm [resolvable:$true] %s319_s23 }
  0x10   :  { %78 = vmatpush.msra.mxu0 %v50_v2  ;;  %342 = vmatpush.msra.mxu2 %v50_v2  ;;  %s317_s1 = sshll.u32 %s456_s0, 4  ;;  %s318_s1 = int_to_ptr.vmem [resolvable:$true] %s317_s1 }
  0x11   :  { %341 = vmatpush.msra.mxu1 %v50_v2  ;;  %343 = vmatpush.msra.mxu3 %v50_v2 }
  0x12   :  { %79 = vmatpush.msra.mxu0 %v49_v3  ;;  %345 = vmatpush.msra.mxu2 %v49_v3 }
  0x13   :  { %344 = vmatpush.msra.mxu1 %v49_v3  ;;  %346 = vmatpush.msra.mxu3 %v49_v3 }
  0x14   :  { %80 = vmatpush.msra.mxu0 %v48_v4  ;;  %348 = vmatpush.msra.mxu2 %v48_v4 }
  0x15   :  { %330 = vmatmul.msk.f32.vlgmr.msra.gmra.mxu0 %vm52_vm0, %v44_v5  ;;  %332 = vmatmul.msk.f32.vlgmr.msra.gmra.mxu2 %vm52_vm0, %v46_v6 }
  0x16   :  { %347 = vmatpush.msra.mxu1 %v48_v4  ;;  %349 = vmatpush.msra.mxu3 %v48_v4 }
  0x17   :  { %331 = vmatmul.msk.f32.vlgmr.msra.gmra.mxu1 %vm52_vm0, %v45_v7  ;;  %333 = vmatmul.msk.f32.vlgmr.msra.gmra.mxu3 %vm52_vm0, %v47_v8 }
  0x18   :  { %359 = vset.pattern.permute.xlu2 %v455_v13 }
  0x92   :  { %v482_v9 = vpop.f32.mrf.mxu0 }
  0x93   :  { %96 = vperm.xlu0 %357, %v482_v9  }
  0x94   :  { %v487_v11 = vpop.f32.mrf.mxu1 }
  0x98   :  { %v485_v10 = vpop.f32.mrf.mxu2 }
  0x99   :  { %104 = vperm.xlu1 %358, %v485_v10  }
  0x9a   :  { %v491_v12 = vpop.f32.mrf.mxu3 }
  0x9b   :  { %100 = vperm.xlu0 %357, %v487_v11  }
  0xa1   :  { %108 = vperm.xlu1 %358, %v491_v12  }
  0xa3   :  { %360 = vset.pattern.permute.xlu0 %v455_v13 }
  0xa9   :  { %361 = vset.pattern.permute.xlu1 %v455_v13 }
 0x105   :  { %v97_v14 = vpop.permute.xlu0 %96 }
 0x106   :  { %v110_v15 = vperm.slane %v97_v14, 0 }
 0x108   :  { %v118_v16 = vadd.f32 %v110_v15, %v482_v9 }
 0x10a   :  { %vm122_vm1 = vcmp.ge.f32.partialorder %v118_v16, 0.0  ;;  %v126_v17 = vmul.f32 0.2, %v118_v16 }
 0x10b   :  { %v105_v18 = vpop.permute.xlu1 %104 }
 0x10c   :  { %v112_v19 = vperm.slane %v105_v18, 0  ;;  %v130_v20 = vsel %vm122_vm1, %v118_v16, %v126_v17 }
 0x10d   :  { %139 = vperm.xlu2 %359, %v130_v20   ;;  %v101_v21 = vpop.permute.xlu0 %100 }
 0x10e   :  { %v120_v22 = vadd.f32 %v112_v19, %v485_v10  ;;  %v111_v23 = vperm.slane %v101_v21, 0 }
 0x110   :  { %v119_v24 = vadd.f32 %v111_v23, %v487_v11  ;;  %vm124_vm2 = vcmp.ge.f32.partialorder %v120_v22, 0.0  ;;  %v128_v25 = vmul.f32 0.2, %v120_v22 }
 0x112   :  { %v132_v26 = vsel %vm124_vm2, %v120_v22, %v128_v25  ;;  %vm123_vm3 = vcmp.ge.f32.partialorder %v119_v24, 0.0  ;;  %v127_v27 = vmul.f32 0.2, %v119_v24 }
 0x113   :  { %v109_v28 = vpop.permute.xlu1 %108  ;;  %145 = vperm.xlu0 %360, %v132_v26  }
 0x114   :  { %v113_v29 = vperm.slane %v109_v28, 0  ;;  %v131_v30 = vsel %vm123_vm3, %v119_v24, %v127_v27 }
 0x115   :  { %142 = vperm.xlu2 %359, %v131_v30  }
 0x116   :  { %v121_v31 = vadd.f32 %v113_v29, %v491_v12 }
 0x118   :  { %vm125_vm4 = vcmp.ge.f32.partialorder %v121_v31, 0.0  ;;  %v129_v32 = vmul.f32 0.2, %v121_v31 }
 0x11a   :  { %v133_v33 = vsel %vm125_vm4, %v121_v31, %v129_v32 }
 0x11b   :  { %148 = vperm.xlu1 %361, %v133_v33  }
 0x167   :  { %v140_v34 = vpop.permute.xlu2 %139 }
 0x168   :  { %v152_v41 = vperm.slane %v140_v34, %v151_v37 }
 0x16f   :  { %v143_v36 = vpop.permute.xlu2 %142 }
 0x170   :  { %v153_v39 = vperm.slane %v143_v36, %v151_v37 }
 0x172   :  { %v157_v43 = vsel %vm156_vm5, %v153_v39, %v152_v41 }
 0x185   :  { %v146_v38 = vpop.permute.xlu0 %145 }
 0x186   :  { %v154_v40 = vperm.slane %v146_v38, %v151_v37 }
 0x188   :  { %v159_v45 = vsel %vm158_vm6, %v154_v40, %v157_v43 }
 0x18d   :  { %v149_v42 = vpop.permute.xlu1 %148 }
 0x18e   :  { %v155_v44 = vperm.slane %v149_v42, %v151_v37 }
 0x190   :  { %v161_v46 = vsel %vm160_vm7, %v155_v44, %v159_v45 }
 0x191   :  { %v164_v47 = vsel %vm163_vm8, %v161_v46, -inf }
 0x192   :  { %165 = vmax.xlane.f32.xlu2 %v164_v47 }
 0x205   :  { %v166_v48 = vpop.xlane.xlu2 %165 }
 0x206   :  { %v168_v49 = vperm.slane %v166_v48, 0  ;;  %v169_v50 = vperm.slane %v166_v48, 1  ;;  %v170_v51 = vperm.slane %v166_v48, 2  ;;  %v171_v54 = vperm.slane %v166_v48, 3 }
 0x208   :  { %v176_v52 = vsub.f32 %v130_v20, %v168_v49  ;;  %v177_v53 = vsub.f32 %v131_v30, %v169_v50  ;;  %v178_v57 = vsub.f32 %v132_v26, %v170_v51  ;;  %v179_v58 = vsub.f32 %v133_v33, %v171_v54 }
 0x20a   :  { %v180_v55 = vmul.f32 1.442695, %v176_v52  ;;  %v182_v56 = vmul.f32 1.442695, %v177_v53  ;;  %v184_v59 = vmul.f32 1.442695, %v178_v57 }
 0x20b   :  { %v186_v60 = vmul.f32 1.442695, %v179_v58 }
 0x20c   :  { %362 = vpow2.f32 %v180_v55 }
 0x20d   :  { %364 = vpow2.f32 %v182_v56 }
 0x20e   :  { %366 = vpow2.f32 %v184_v59 }
 0x20f   :  { %368 = vpow2.f32 %v186_v60 }
 0x212   :  { %v363_v61 = vpop.eup %362 }
 0x213   :  { %v365_v62 = vpop.eup %364  ;;  %193 = vperm.xlu1 %361, %v363_v61  }
 0x214   :  { %196 = vperm.xlu0 %360, %v365_v62   ;;  %v367_v63 = vpop.eup %366 }
 0x215   :  { %v369_v0 = vpop.eup %368 }
 0x21b   :  { %199 = vperm.xlu1 %361, %v367_v63  }
 0x21c   :  { %202 = vperm.xlu0 %360, %v369_v0  }
 0x285   :  { %v194_v1 = vpop.permute.xlu1 %193 }
 0x286   :  { %v197_v2 = vpop.permute.xlu0 %196  ;;  %v204_v4 = vperm.slane %v194_v1, %v151_v37 }
 0x287   :  { %v205_v3 = vperm.slane %v197_v2, %v151_v37 }
 0x289   :  { %v208_v8 = vsel %vm156_vm5, %v205_v3, %v204_v4 }
 0x28d   :  { %v200_v5 = vpop.permute.xlu1 %199 }
 0x28e   :  { %v203_v6 = vpop.permute.xlu0 %202  ;;  %v206_v7 = vperm.slane %v200_v5, %v151_v37 }
 0x28f   :  { %v207_v13 = vperm.slane %v203_v6, %v151_v37 }
 0x290   :  { %v209_v14 = vsel %vm158_vm6, %v206_v7, %v208_v8 }
 0x291   :  { %v210_v15 = vsel %vm160_vm7, %v207_v13, %v209_v14 }
 0x292   :  { %v212_v16 = vsel %vm163_vm8, %v210_v15, 0.0 }
 0x293   :  { %213 = vadd.xlane.f32.xlu1 %v212_v16 }
 0x306   :  { %v214_v17 = vpop.xlane.xlu1 %213 }
 0x307   :  { %370 = vrcp.f32 %v214_v17  ;;  %v226_v21 = vand.u32 2147483648, %v214_v17  ;;  %v224_v23 = vand.u32 2147483647, %v214_v17  ;;  %vm220_vm10 = vweird.f32 %v214_v17 }
 0x309   :  { %v227_v25 = vor.u32 1.1754944e-38, %v226_v21  ;;  %vm225_vm12 = vcmp.eq.f32.partialorder %v224_v23, 8.507059e+37 }
 0x30d   :  { %v371_v18 = vpop.eup %370 }
 0x30e   :  { %v216_v19 = vmul.f32 %v371_v18, %v214_v17  ;;  %vm221_vm9 = vweird.f32 %v371_v18 }
 0x30f   :  { %vm222_vm11 = vmor %vm220_vm10, %vm221_vm9 }
 0x310   :  { %v217_v20 = vsub.f32 1.0, %v216_v19 }
 0x312   :  { %v218_v22 = vmul.f32 %v371_v18, %v217_v20 }
 0x314   :  { %v219_v24 = vadd.f32 %v371_v18, %v218_v22 }
 0x316   :  { %v223_v26 = vsel %vm222_vm11, %v371_v18, %v219_v24 }
 0x317   :  { %v228_v27 = vsel %vm225_vm12, %v227_v25, %v223_v26 }
 0x318   :  { %v232_v28 = vperm.slane %v228_v27, 2  ;;  %v230_v29 = vperm.slane %v228_v27, 0  ;;  %v231_v32 = vperm.slane %v228_v27, 1  ;;  %v233_v39 = vperm.slane %v228_v27, 3 }
 0x31a   :  { %v240_v30 = vmul.f32 %v367_v63, %v232_v28  ;;  %v238_v31 = vmul.f32 %v363_v61, %v230_v29  ;;  %v239_v37 = vmul.f32 %v365_v62, %v231_v32  ;;  %v241_v41 = vmul.f32 %v369_v0, %v233_v39 }
 0x31c   :  { %v336_v33 = vadd.f32 -0.001, %v240_v30  ;;  %v334_v34 = vadd.f32 -0.001, %v238_v31  ;;  %v335_v38 = vadd.f32 -0.001, %v239_v37 }
 0x31d   :  { %v337_v42 = vadd.f32 -0.001, %v241_v41 }
 0x31e   :  { %v248_v35 = vmax.f32 %v336_v33, 0.0  ;;  %v246_v36 = vmax.f32 %v334_v34, 0.0  ;;  %v247_v40 = vmax.f32 %v335_v38, 0.0 }
 0x31f   :  { %v249_v43 = vmax.f32 %v337_v42, 0.0 }
 0x320   :  { %262 = vperm.xlu2 %359, %v248_v35   ;;  %252 = vperm.xlu0 %360, %v246_v36  }
 0x328   :  { %257 = vperm.xlu0 %360, %v247_v40  }
 0x330   :  { %267 = vperm.xlu0 %360, %v249_v43  }
 0x37a   :  { %v263_v44 = vpop.permute.xlu2 %262 }
 0x37b   :  { %v272_v47 = vmul.f32 %v263_v44, %v485_v10 }
 0x37d   :  { %v288_v49 = vsel %vm52_vm0, %v272_v47, 0.0 }
 0x37e   :  { %v289_v52 = vrot.slane %v288_v49, 4 }
 0x380   :  { %v290_v57 = vadd.f32 %v289_v52, %v288_v49 }
 0x382   :  { %v291_v61 = vrot.slane %v290_v57, 2 }
 0x384   :  { %v292_v3 = vadd.f32 %v291_v61, %v290_v57 }
 0x386   :  { %v293_v7 = vrot.slane %v292_v3, 1 }
 0x392   :  { %v253_v45 = vpop.permute.xlu0 %252 }
 0x393   :  { %v270_v46 = vmul.f32 %v253_v45, %v482_v9 }
 0x395   :  { %v274_v48 = vsel %vm52_vm0, %v270_v46, 0.0 }
 0x396   :  { %v275_v50 = vrot.slane %v274_v48, 4 }
 0x398   :  { %v276_v54 = vadd.f32 %v275_v50, %v274_v48 }
 0x39a   :  { %v258_v51 = vpop.permute.xlu0 %257  ;;  %v277_v58 = vrot.slane %v276_v54, 2 }
 0x39b   :  { %v271_v53 = vmul.f32 %v258_v51, %v487_v11 }
 0x39c   :  { %v278_v62 = vadd.f32 %v277_v58, %v276_v54 }
 0x39d   :  { %v281_v55 = vsel %vm52_vm0, %v271_v53, 0.0 }
 0x39e   :  { %v282_v56 = vrot.slane %v281_v55, 4  ;;  %v279_v11 = vrot.slane %v278_v62, 1 }
 0x3a0   :  { %v283_v59 = vadd.f32 %v282_v56, %v281_v55  ;;  %v280_v8 = vadd.f32 %v279_v11, %v278_v62 }
 0x3a2   :  { %v284_v60 = vrot.slane %v283_v59, 2  ;;  %v268_v9 = vpop.permute.xlu0 %267 }
 0x3a3   :  { %v273_v10 = vmul.f32 %v268_v9, %v491_v12  ;;  %v294_v12 = vadd.f32 %v293_v7, %v292_v3 }
 0x3a4   :  { %v285_v63 = vadd.f32 %v284_v60, %v283_v59 }
 0x3a5   :  { %v295_v0 = vsel %vm52_vm0, %v273_v10, 0.0 }
 0x3a6   :  { %v286_v1 = vrot.slane %v285_v63, 1  ;;  %v296_v2 = vrot.slane %v295_v0, 4 }
 0x3a8   :  { %v297_v4 = vadd.f32 %v296_v2, %v295_v0  ;;  %v287_v5 = vadd.f32 %v286_v1, %v285_v63 }
 0x3aa   :  { %v298_v6 = vrot.slane %v297_v4, 2  ;;  %v306_v15 = vsel %vm156_vm5, %v287_v5, %v280_v8 }
 0x3ab   :  { %v307_v17 = vsel %vm158_vm6, %v294_v12, %v306_v15 }
 0x3ac   :  { %v299_v13 = vadd.f32 %v298_v6, %v297_v4 }
 0x3ae   :  { %v300_v14 = vrot.slane %v299_v13, 1 }
 0x3b0   :  { %v301_v16 = vadd.f32 %v300_v14, %v299_v13 }
 0x3b2   :  { %v308_v18 = vsel %vm160_vm7, %v301_v16, %v307_v17 }
 0x3b3   :  { %311 = vst.msk [vmem:[#allocation7] sm:$0xf] %vm310_vm13, %v308_v18 }
 0x3b4   :  { %322 = dma.vmem_to_hbm [thread:$0]  %s318_s1, 64, %s320_s23, [#allocation4]  }
 0x3b5   :  { %448 = dma.done.wait [#allocation4], 64  }
 0x3b6   :  { %449 = vsyncadd [#allocation4], 4294967232 }
 0x3b7   :  { %327 = vsyncpa [#allocation3], 1 }
 0x3b8   :  { %328 = vsyncpa [#allocation6], 1 }
 0x3b9   :  { %329 = vsyncpa [#allocation4], 1 }

</bundles_post_ra>
